<compile_context>
chip_gen: v7x
topology: tpu7x:2x2x1
jax: 0.10.0
libtpu: 0.0.40
codegen_flags: <defaults>
</compile_context>

<pallas_src>
import functools

import jax
import jax.numpy as jnp
from jax.experimental import pallas as pl
from jax.experimental.pallas import tpu as pltpu


def _pick_tile(n, target):
    """Largest tile <= target that divides n and keeps sublane (8) alignment.

    Falls back to the full extent (always a legal block shape)."""
    if n <= target:
        return n
    for t in range(target, 0, -1):
        if n % t == 0 and t % 8 == 0:
            return t
    return n


# --------------------------------------------------------------------------
# Phase 1: fused QKV projection over flattened (B*N, D) rows.
# --------------------------------------------------------------------------
def _qkv_proj_kernel(x_ref, w_ref, b_ref, q_ref, k_ref, v_ref, *, dim, scale):
    x = x_ref[...]                                    # (tm, D)   compute dtype
    w = w_ref[...]                                    # (D, 3D)   compute dtype
    qkv = jnp.dot(x, w, preferred_element_type=jnp.float32) + b_ref[...]
    # q is pre-scaled here (matches `q = q * self.scale` in the module).
    q_ref[...] = (qkv[:, :dim] * scale).astype(q_ref.dtype)
    k_ref[...] = qkv[:, dim:2 * dim].astype(k_ref.dtype)
    v_ref[...] = qkv[:, 2 * dim:].astype(v_ref.dtype)


# --------------------------------------------------------------------------
# Phase 2: flash attention (online softmax) + fused output projection.
# --------------------------------------------------------------------------
def _flash_attn_kernel(q_ref, k_ref, v_ref, wp_ref, bp_ref, o_ref,
                       m_ref, l_ref, acc_ref,
                       *, num_heads, head_dim, compute_dtype, approx_recip):
    kv = pl.program_id(2)

    @pl.when(kv == 0)
    def _init():
        m_ref[...] = jnp.full_like(m_ref, -jnp.inf)
        l_ref[...] = jnp.zeros_like(l_ref)
        acc_ref[...] = jnp.zeros_like(acc_ref)

    q = q_ref[0]                                      # (tq, D)
    k = k_ref[0]                                      # (tk, D)
    v = v_ref[0]                                      # (tk, D)

    # Unrolled head loop over lane-contiguous column slices (no (N,H,hd)
    # reshape / relayout).  Per-head running max / sum live in (tq, H)
    # scratch; per-head output accumulators in columns of the (tq, D) scratch.
    for h in range(num_heads):
        lo, hi = h * head_dim, (h + 1) * head_dim
        qh = q[:, lo:hi]
        kh = k[:, lo:hi]
        vh = v[:, lo:hi]

        # scores: (tq, hd) x (tk, hd) contracting head_dim -> (tq, tk), f32 acc
        s = jax.lax.dot_general(qh, kh, (((1,), (1,)), ((), ())),
                                preferred_element_type=jnp.float32)

        m_prev = m_ref[:, h:h + 1]                                   # (tq, 1)
        m_new = jnp.maximum(m_prev, jnp.max(s, axis=-1, keepdims=True))
        alpha = jnp.exp(m_prev - m_new)                              # (tq, 1)
        p = jnp.exp(s - m_new)                                       # (tq, tk)

        l_ref[:, h:h + 1] = alpha * l_ref[:, h:h + 1] + jnp.sum(
            p, axis=-1, keepdims=True)
        acc_ref[:, lo:hi] = alpha * acc_ref[:, lo:hi] + jnp.dot(
            p.astype(compute_dtype), vh, preferred_element_type=jnp.float32)
        m_ref[:, h:h + 1] = m_new

    @pl.when(kv == pl.num_programs(2) - 1)
    def _finalize():
        inv_l = pl.reciprocal(l_ref[...], approx=approx_recip)       # (tq, H)
        out = jnp.concatenate(
            [acc_ref[:, h * head_dim:(h + 1) * head_dim] * inv_l[:, h:h + 1]
             for h in range(num_heads)], axis=1)                     # (tq, D)
        # fused output projection
        o = jnp.dot(out.astype(compute_dtype), wp_ref[...],
                    preferred_element_type=jnp.float32) + bp_ref[...]
        o_ref[0] = o.astype(o_ref.dtype)


# --------------------------------------------------------------------------
# Wrapper
# --------------------------------------------------------------------------
def attention_pallas(x, w_qkv, q_bias, v_bias, w_proj, b_proj, *,
                     num_heads, q_tile=256, kv_tile=256, row_tile=512,
                     compute_dtype=None):
    """x: (B, N, D); w_qkv: (D, 3D) (in,out); w_proj: (D, D) (in,out).

    q_tile/kv_tile default to 256 (v6e/v7x MXU); use 128 on v5e.
    compute_dtype: dtype fed to the MXU (f32 accumulation is always used).
    """
    b, n, d = x.shape
    assert d % num_heads == 0
    head_dim = d // num_heads
    scale = head_dim ** (-0.5)

    if compute_dtype is None:
        compute_dtype = (jnp.bfloat16 if x.dtype == jnp.bfloat16
                         else jnp.float32)
    out_dtype = x.dtype
    vmem_limit = 48 * 1024 * 1024          # leaves headroom on v7x (64 MiB)

    # Operands for the MXU in compute dtype (halves weight/activation DMA
    # traffic on the bf16 path). Biases stay f32 (added post-accumulation).
    x_c = x.astype(compute_dtype)
    w_qkv_c = w_qkv.astype(compute_dtype)
    w_proj_c = w_proj.astype(compute_dtype)

    qkv_bias = jnp.concatenate(
        [q_bias, jnp.zeros_like(v_bias), v_bias]
    ).astype(jnp.float32).reshape(1, 3 * d)
    b_proj2 = b_proj.astype(jnp.float32).reshape(1, d)

    # ---------------- phase 1: QKV projection over flattened rows ----------
    m = b * n
    x_flat = x_c.reshape(m, d)
    tm = _pick_tile(m, row_tile)

    qkv_kernel = functools.partial(_qkv_proj_kernel, dim=d, scale=scale)
    q, k, v = pl.pallas_call(
        qkv_kernel,
        out_shape=(jax.ShapeDtypeStruct((m, d), compute_dtype),
                   jax.ShapeDtypeStruct((m, d), compute_dtype),
                   jax.ShapeDtypeStruct((m, d), compute_dtype)),
        grid_spec=pltpu.PrefetchScalarGridSpec(
            num_scalar_prefetch=0,
            grid=(m // tm,),
            in_specs=[
                pl.BlockSpec((tm, d), lambda i: (i, 0)),       # x rows
                pl.BlockSpec((d, 3 * d), lambda i: (0, 0)),    # w_qkv (const)
                pl.BlockSpec((1, 3 * d), lambda i: (0, 0)),    # qkv bias
            ],
            out_specs=(
                pl.BlockSpec((tm, d), lambda i: (i, 0)),
                pl.BlockSpec((tm, d), lambda i: (i, 0)),
                pl.BlockSpec((tm, d), lambda i: (i, 0)),
            ),
        ),
        compiler_params=pltpu.CompilerParams(
            dimension_semantics=("parallel",),
            vmem_limit_bytes=vmem_limit),
    )(x_flat, w_qkv_c, qkv_bias)

    q = q.reshape(b, n, d)
    k = k.reshape(b, n, d)
    v = v.reshape(b, n, d)

    # ------- phase 2: flash attention + output projection ------------------
    tq = _pick_tile(n, q_tile)
    tk = _pick_tile(n, kv_tile)

    flash_kernel = functools.partial(
        _flash_attn_kernel,
        num_heads=num_heads, head_dim=head_dim,
        compute_dtype=compute_dtype,
        # exact reciprocal on the strict-f32 path; EUP vrcp on the fast path
        approx_recip=(compute_dtype != jnp.float32))

    out = pl.pallas_call(
        flash_kernel,
        out_shape=jax.ShapeDtypeStruct((b, n, d), out_dtype),
        grid_spec=pltpu.PrefetchScalarGridSpec(
            num_scalar_prefetch=0,
            grid=(b, n // tq, n // tk),
            in_specs=[
                pl.BlockSpec((1, tq, d), lambda bi, qi, ki: (bi, qi, 0)),  # q
                pl.BlockSpec((1, tk, d), lambda bi, qi, ki: (bi, ki, 0)),  # k
                pl.BlockSpec((1, tk, d), lambda bi, qi, ki: (bi, ki, 0)),  # v
                pl.BlockSpec((d, d), lambda bi, qi, ki: (0, 0)),     # w_proj
                pl.BlockSpec((1, d), lambda bi, qi, ki: (0, 0)),     # b_proj
            ],
            out_specs=pl.BlockSpec((1, tq, d), lambda bi, qi, ki: (bi, qi, 0)),
            scratch_shapes=[
                pltpu.VMEM((tq, num_heads), jnp.float32),   # running max  m
                pltpu.VMEM((tq, num_heads), jnp.float32),   # running sum  l
                pltpu.VMEM((tq, d), jnp.float32),           # output accum
            ],
        ),
        compiler_params=pltpu.CompilerParams(
            dimension_semantics=("parallel", "parallel", "arbitrary"),
            vmem_limit_bytes=vmem_limit),
    )(q, k, v, w_proj_c, b_proj2)

    return out


# --------------------------------------------------------------------------
# Pure-JAX reference (mirrors the PyTorch forward)
# --------------------------------------------------------------------------
def attention_reference(x, w_qkv, q_bias, v_bias, w_proj, b_proj, *, num_heads):
    b, n, d = x.shape
    head_dim = d // num_heads
    scale = head_dim ** (-0.5)
    qkv_bias = jnp.concatenate([q_bias, jnp.zeros_like(v_bias), v_bias])
    qkv = x @ w_qkv + qkv_bias                               # (B, N, 3D)
    qkv = qkv.reshape(b, n, 3, num_heads, head_dim).transpose(2, 0, 3, 1, 4)
    q, k, v = qkv[0], qkv[1], qkv[2]                         # (B, H, N, hd)
    q = q * scale
    attn = jax.nn.softmax(q @ jnp.swapaxes(k, -2, -1), axis=-1)
    out = (attn @ v).transpose(0, 2, 1, 3).reshape(b, n, d)
    return out @ w_proj + b_proj


if __name__ == "__main__":
    B, N, D, H = 2, 8, 32, 8

    key = jax.random.PRNGKey(0)
    kx, kqkv, kqb, kvb, kpw, kpb = jax.random.split(key, 6)

    x = jax.random.normal(kx, (B, N, D), dtype=jnp.float32)
    w_qkv = jax.random.normal(kqkv, (D, 3 * D), dtype=jnp.float32) * 0.05
    q_bias = jax.random.normal(kqb, (D,), dtype=jnp.float32) * 0.05
    v_bias = jax.random.normal(kvb, (D,), dtype=jnp.float32) * 0.05
    w_proj = jax.random.normal(kpw, (D, D), dtype=jnp.float32) * 0.05
    b_proj = jax.random.normal(kpb, (D,), dtype=jnp.float32) * 0.05

    ref = attention_reference(x, w_qkv, q_bias, v_bias, w_proj, b_proj,
                              num_heads=H)

    # strict f32 path
    out = attention_pallas(x, w_qkv, q_bias, v_bias, w_proj, b_proj,
                           num_heads=H)
    out = jax.block_until_ready(out)
    assert out.shape == (B, N, D)
    assert jnp.allclose(out, ref, atol=1e-4, rtol=1e-4), "f32 mismatch"

    # bf16 MXU fast path (f32 accumulation), looser tolerance
    out_bf16 = attention_pallas(x, w_qkv, q_bias, v_bias, w_proj, b_proj,
                                num_heads=H, compute_dtype=jnp.bfloat16)
    out_bf16 = jax.block_until_ready(out_bf16)
    assert jnp.allclose(out_bf16.astype(jnp.float32), ref,
                        atol=5e-2, rtol=5e-2), "bf16 mismatch"

    print("KERNEL_OK")
</pallas_src>

<mosaic_0001>
module attributes {stable_mosaic.version = 11 : i64} {
  func.func @_qkv_proj_kernel(%arg0: i32, %arg1: memref<16x32xf32, #tpu.memory_space<vmem>>, %arg2: memref<32x96xf32, #tpu.memory_space<vmem>>, %arg3: memref<1x96xf32, #tpu.memory_space<vmem>>, %arg4: memref<16x32xf32, #tpu.memory_space<vmem>>, %arg5: memref<16x32xf32, #tpu.memory_space<vmem>>, %arg6: memref<16x32xf32, #tpu.memory_space<vmem>>) attributes {dimension_semantics = [#tpu.dimension_semantics<parallel>], iteration_bounds = array<i64: 1>, scalar_prefetch = 0 : i64, scratch_operands = 0 : i64, tpu.core_type = #tpu.core_type<tc>, window_params = [{transform_indices = @transform_0, window_bounds = array<i64: 16, 32>}, {pipeline_mode = #tpu.pipeline_mode<synchronous>, transform_indices = @transform_1, window_bounds = array<i64: 32, 96>}, {pipeline_mode = #tpu.pipeline_mode<synchronous>, transform_indices = @transform_2, window_bounds = array<i64: 1, 96>}, {transform_indices = @transform_3, window_bounds = array<i64: 16, 32>}, {transform_indices = @transform_4, window_bounds = array<i64: 16, 32>}, {transform_indices = @transform_5, window_bounds = array<i64: 16, 32>}]} {
    %c0 = arith.constant 0 : index
    %c0_0 = arith.constant 0 : index
    %0 = vector.load %arg1[%c0, %c0_0] : memref<16x32xf32, #tpu.memory_space<vmem>>, vector<16x32xf32>
    %c0_1 = arith.constant 0 : index
    %c0_2 = arith.constant 0 : index
    %1 = vector.load %arg2[%c0_1, %c0_2] : memref<32x96xf32, #tpu.memory_space<vmem>>, vector<32x96xf32>
    %cst = arith.constant dense<0.000000e+00> : vector<16x96xf32>
    %2 = tpu.matmul %0, %1, %cst {dimension_numbers = #tpu.dot_dimension_numbers<[1], [0], [0], [1], [0, 0, 1, 1], [], []>} : vector<16x32xf32>, vector<32x96xf32>, vector<16x96xf32> -> vector<16x96xf32>
    %c0_3 = arith.constant 0 : index
    %c0_4 = arith.constant 0 : index
    %3 = vector.load %arg3[%c0_3, %c0_4] : memref<1x96xf32, #tpu.memory_space<vmem>>, vector<1x96xf32>
    %4 = vector.broadcast %3 : vector<1x96xf32> to vector<16x96xf32>
    %5 = arith.addf %2, %4 : vector<16x96xf32>
    %6 = vector.extract_strided_slice %5 {offsets = [0, 0], sizes = [16, 32], strides = [1, 1]} : vector<16x96xf32> to vector<16x32xf32>
    %cst_5 = arith.constant 5.000000e-01 : f32
    %7 = vector.broadcast %cst_5 : f32 to vector<16x32xf32>
    %8 = arith.mulf %6, %7 : vector<16x32xf32>
    %c0_6 = arith.constant 0 : index
    %c0_7 = arith.constant 0 : index
    %9 = vector.load %arg4[%c0_6, %c0_7] : memref<16x32xf32, #tpu.memory_space<vmem>>, vector<16x32xf32>
    tpu.vector_store %arg4[%c0_6, %c0_7], %8 {strides = array<i32>} : memref<16x32xf32, #tpu.memory_space<vmem>>, vector<16x32xf32>,
    %10 = vector.extract_strided_slice %5 {offsets = [0, 32], sizes = [16, 32], strides = [1, 1]} : vector<16x96xf32> to vector<16x32xf32>
    %c0_8 = arith.constant 0 : index
    %c0_9 = arith.constant 0 : index
    %11 = vector.load %arg5[%c0_8, %c0_9] : memref<16x32xf32, #tpu.memory_space<vmem>>, vector<16x32xf32>
    tpu.vector_store %arg5[%c0_8, %c0_9], %10 {strides = array<i32>} : memref<16x32xf32, #tpu.memory_space<vmem>>, vector<16x32xf32>,
    %12 = vector.extract_strided_slice %5 {offsets = [0, 64], sizes = [16, 32], strides = [1, 1]} : vector<16x96xf32> to vector<16x32xf32>
    %c0_10 = arith.constant 0 : index
    %c0_11 = arith.constant 0 : index
    %13 = vector.load %arg6[%c0_10, %c0_11] : memref<16x32xf32, #tpu.memory_space<vmem>>, vector<16x32xf32>
    tpu.vector_store %arg6[%c0_10, %c0_11], %12 {strides = array<i32>} : memref<16x32xf32, #tpu.memory_space<vmem>>, vector<16x32xf32>,
    return
  }
  func.func @transform_0(%arg0: i32) -> (i32, i32) {
    %c0_i32 = arith.constant 0 : i32
    %c0_i32_0 = arith.constant 0 : i32
    return %arg0, %c0_i32 : i32, i32
  }
  func.func @transform_1(%arg0: i32) -> (i32, i32) {
    %c0_i32 = arith.constant 0 : i32
    %c0_i32_0 = arith.constant 0 : i32
    %c0_i32_1 = arith.constant 0 : i32
    return %c0_i32, %c0_i32_0 : i32, i32
  }
  func.func @transform_2(%arg0: i32) -> (i32, i32) {
    %c0_i32 = arith.constant 0 : i32
    %c0_i32_0 = arith.constant 0 : i32
    %c0_i32_1 = arith.constant 0 : i32
    return %c0_i32, %c0_i32_0 : i32, i32
  }
  func.func @transform_3(%arg0: i32) -> (i32, i32) {
    %c0_i32 = arith.constant 0 : i32
    %c0_i32_0 = arith.constant 0 : i32
    return %arg0, %c0_i32 : i32, i32
  }
  func.func @transform_4(%arg0: i32) -> (i32, i32) {
    %c0_i32 = arith.constant 0 : i32
    %c0_i32_0 = arith.constant 0 : i32
    return %arg0, %c0_i32 : i32, i32
  }
  func.func @transform_5(%arg0: i32) -> (i32, i32) {
    %c0_i32 = arith.constant 0 : i32
    %c0_i32_0 = arith.constant 0 : i32
    return %arg0, %c0_i32 : i32, i32
  }
}

</mosaic_0001>

<bundles_post_ra>
// kernel: tpu_custom_call.1
= control target key start
LH: loop header
LB: loop body
LE: loop exit
PB: predicated region body
PF: predicated region fallthrough
CT: control target
= control target key end

     0   :  { %11 = vsyncpa [#allocation3], 0  ;;  %s500_s0 = inlined_call_operand.hbm [shape: f32[16,32], index: 0, kind: input, shape index: {}]   ;;  %s501_s1 = inlined_call_operand.hbm [shape: f32[32,96], index: 1, kind: input, shape index: {}]   ;;  %s502_s2 = inlined_call_operand.vmem [shape: f32[1,96], index: 2, kind: input, shape index: {}]   ;;  %s503_s3 = inlined_call_operand.hbm [shape: f32[16,32], index: 3, kind: output, shape index: {0}]   ;;  %s504_s4 = inlined_call_operand.hbm [shape: f32[16,32], index: 4, kind: output, shape index: {1}]   ;;  %s505_s5 = inlined_call_operand.hbm [shape: f32[16,32], index: 5, kind: output, shape index: {2}]  }
   0x1   :  { %12 = vsyncpa [#allocation6], 0 }
   0x2   :  { %13 = vsyncpa [#allocation4], 0 }
   0x3   :  { %14 = vsyncpa [#allocation9], 0  ;;  %s368_s18 = smov [#allocation2]   ;;  %s250_s22 = scalar_lea.hbm %s500_s0, 256 }
   0x4   :  { %s20_s19 = sshll.u32 %s368_s18, 4  ;;  %p251_p0 = scmp.ne.s32.totalorder %s500_s0, %s250_s22  ;;  %s21_s19 = int_to_ptr.vmem [resolvable:$true] %s20_s19 }
   0x5   :  { %p254_p1 = scmp.lt.u32.totalorder %s250_s22, %s500_s0 }
   0x7   :  { %p256_p2 = pnand %p254_p1, %p251_p0 }
   0x9   :  { %259 = shalt.err (!%p256_p2)
}
   0xa   :  { %s260_s27 = scalar_lea.vmem %s21_s19, 256  ;;  %p265_p4 = scmp.lt.s32.totalorder %s21_s19, %s21_s19 }
   0xb   :  { %p261_p3 = scmp.ne.s32.totalorder %s21_s19, %s260_s27  ;;  %p266_p5 = scmp.lt.s32.totalorder %s260_s27, %s260_s27 }
   0xd   :  { %p267_p6 = por %p266_p5, %p265_p4 }
   0xf   :  { %p268_p7 = pnand %p267_p6, %p261_p3 }
  0x11   :  { %271 = shalt.err (!%p268_p7)
}
  0x12   :  { %s369_s28 = smov 128   ;;  %s370_s29 = smov 8  }
  0x13   :  { %26 = dma.hbm_to_vmem [thread:$0]  %s500_s0, 256, %s21_s19, [#allocation3], %s369_s28, %s369_s28, %s370_s29  }
  0x14   :  { %s371_s7 = smov [#allocation5]   ;;  %s272_s11 = scalar_lea.hbm %s501_s1, 512 }
  0x15   :  { %s32_s8 = sshll.u32 %s371_s7, 4  ;;  %p273_p8 = scmp.ne.s32.totalorder %s501_s1, %s272_s11  ;;  %s33_s8 = int_to_ptr.vmem [resolvable:$true] %s32_s8 }
  0x16   :  { %p276_p9 = scmp.lt.u32.totalorder %s272_s11, %s501_s1 }
  0x18   :  { %p278_p10 = pnand %p276_p9, %p273_p8 }
  0x1a   :  { %281 = shalt.err (!%p278_p10)
}
  0x1b   :  { %s282_s16 = scalar_lea.vmem %s33_s8, 512  ;;  %p287_p12 = scmp.lt.s32.totalorder %s33_s8, %s33_s8 }
  0x1c   :  { %p283_p11 = scmp.ne.s32.totalorder %s33_s8, %s282_s16  ;;  %p288_p13 = scmp.lt.s32.totalorder %s282_s16, %s282_s16 }
  0x1e   :  { %p289_p0 = por %p288_p13, %p287_p12 }
  0x20   :  { %p290_p1 = pnand %p289_p0, %p283_p11 }
  0x22   :  { %293 = shalt.err (!%p290_p1)
}
  0x23   :  { %38 = dma.hbm_to_vmem [thread:$0]  %s501_s1, 512, %s33_s8, [#allocation6], %s369_s28, %s369_s28, %s370_s29  }
  0x24   :  { %360 = dma.done.wait [#allocation3], 256  }
  0x25   :  { %361 = vsyncadd [#allocation3], 4294967040 }
  0x26   :  { %362 = dma.done.wait [#allocation6], 512  }
  0x27   :  { %363 = vsyncadd [#allocation6], 4294966784  ;;  %vm60_vm0 = vcmask 261120   ;;  %v49_v0 = vld [vmem:[#allocation5] sm:$0xff]  ;;  %v50_v1 = vld [vmem:[#allocation5 + $0x8] sm:$0xff]  ;;  %s372_s19 = smov [#allocation7]  }
  0x28   :  { %v51_v2 = vld [vmem:[#allocation5 + $0x10] sm:$0xff]  ;;  %v233_v3 = vpack.c.bf16 %v50_v1, %v49_v0  ;;  %v52_v4 = vld [vmem:[#allocation5 + $0x18] sm:$0xff]  ;;  %s169_s20 = sshll.u32 %s372_s19, 4  ;;  %s373_s21 = smov 64   ;;  %s170_s20 = int_to_ptr.vmem [resolvable:$true] %s169_s20 }
  0x29   :  { %v47_v5 = vld [vmem:[#allocation2] sm:$0xff]  ;;  %v237_v6 = vpack.c.bf16 %v52_v4, %v51_v2  ;;  %v48_v7 = vld [vmem:[#allocation2 + $0x8] sm:$0xff]  ;;  %s374_s22 = smov 96   ;;  %s294_s23 = scalar_lea.vmem %s170_s20, 256 }
  0x2a   :  { %230 = vmatprep.mubr.msk.f32.mxu0 %vm60_vm0, %v47_v5  ;;  %234 = vmatprep.subr.bf16.mxu0 %v233_v3  ;;  %v213_v8 = vld [vmem:[%s502_s2] ss:$0 sm:$0xff]  ;;  %p295_p2 = scmp.ne.s32.totalorder %s170_s20, %s294_s23  ;;  %p299_p3 = scmp.lt.s32.totalorder %s170_s20, %s170_s20 }
  0x2b   :  { %236 = vmatpush3.bf16.msra.mxu0 %v233_v3  ;;  %p300_p4 = scmp.lt.s32.totalorder %s294_s23, %s294_s23 }
  0x2c   :  { %238 = vmatprep.subr.bf16.mxu0 %v237_v6 }
  0x2d   :  { %p301_p5 = por %p300_p4, %p299_p3 }
  0x2f   :  { %240 = vmatpush3.bf16.msra.mxu0 %v237_v6  ;;  %p302_p6 = pnand %p301_p5, %p295_p2 }
  0x32   :  { %231 = vmatmul.mubr.msk.f32.vlgmr.msra.gmra.mrb[0].mxu0 %vm60_vm0, %v48_v7 }
 0x105   :  { %v232_v9 = vpop.f32.mrb[0].mxu0 }
 0x106   :  { %v139_v10 = vadd.f32 %v232_v9, %v213_v8  ;;  %v133_v11 = vpop.f32.mrb[1].mxu0 }
 0x107   :  { %v134_v12 = vadd.f32 %v213_v8, %v133_v11 }
 0x108   :  { %v143_v13 = vmul.f32 0.5, %v139_v10 }
 0x109   :  { %v142_v14 = vmul.f32 0.5, %v134_v12  ;;  %156 = vrot.lane.b32.xlu1 %v134_v12, %s373_s21  ;;  %148 = vrot.lane.b32.xlu0 %v134_v12, %s374_s22 }
 0x10a   :  { %145 = vst.msk [vmem:[#allocation7 + $0x8] sm:$0xff] %vm60_vm0, %v143_v13 }
 0x10b   :  { %144 = vst.msk [vmem:[#allocation7] sm:$0xff] %vm60_vm0, %v142_v14 }
 0x10c   :  { %305 = shalt.err (!%p302_p6)
}
 0x10d   :  { %s306_s25 = scalar_lea.hbm %s503_s3, 256 }
 0x10e   :  { %p307_p7 = scmp.ne.s32.totalorder %s503_s3, %s306_s25  ;;  %p310_p8 = scmp.lt.u32.totalorder %s306_s25, %s503_s3 }
 0x110   :  { %p312_p9 = pnand %p310_p8, %p307_p7 }
 0x112   :  { %315 = shalt.err (!%p312_p9)
}
 0x113   :  { %175 = dma.vmem_to_hbm [thread:$0]  %s170_s20, 256, %s503_s3, [#allocation4], %s369_s28, %s369_s28, %s370_s29  }
 0x114   :  { %158 = vrot.lane.b32.xlu1 %v139_v10, %s373_s21  ;;  %150 = vrot.lane.b32.xlu0 %v139_v10, %s374_s22  ;;  %s375_s9 = smov [#allocation8]   ;;  %s376_s11 = smov [#allocation10]  }
 0x115   :  { %s181_s10 = sshll.u32 %s375_s9, 4  ;;  %s193_s12 = sshll.u32 %s376_s11, 4  ;;  %s182_s10 = int_to_ptr.vmem [resolvable:$true] %s181_s10  ;;  %s461_s12 = int_to_ptr.vmem [resolvable:$true] %s193_s12 }
 0x116   :  { %s316_s3 = scalar_lea.vmem %s182_s10, 256  ;;  %p321_p11 = scmp.lt.s32.totalorder %s182_s10, %s182_s10 }
 0x117   :  { %p317_p10 = scmp.ne.s32.totalorder %s182_s10, %s316_s3  ;;  %p322_p12 = scmp.lt.s32.totalorder %s316_s3, %s316_s3 }
 0x119   :  { %p323_p13 = por %p322_p12, %p321_p11 }
 0x11b   :  { %p324_p0 = pnand %p323_p13, %p317_p10 }
 0x17b   :  { %v157_v15 = vpop.permute.xlu1 %156  ;;  %v149_v16 = vpop.permute.xlu0 %148 }
 0x17c   :  { %162 = vst.msk [vmem:[#allocation10] sm:$0xff] %vm60_vm0, %v157_v15  ;;  %154 = vst.msk [vmem:[#allocation8] sm:$0xff] %vm60_vm0, %v149_v16 }
 0x186   :  { %v159_v17 = vpop.permute.xlu1 %158  ;;  %v151_v18 = vpop.permute.xlu0 %150 }
 0x187   :  { %163 = vst.msk [vmem:[#allocation10 + $0x8] sm:$0xff] %vm60_vm0, %v159_v17  ;;  %155 = vst.msk [vmem:[#allocation8 + $0x8] sm:$0xff] %vm60_vm0, %v151_v18 }
 0x188   :  { %327 = shalt.err (!%p324_p0)
}
 0x189   :  { %s328_s15 = scalar_lea.hbm %s504_s4, 256 }
 0x18a   :  { %p329_p1 = scmp.ne.s32.totalorder %s504_s4, %s328_s15  ;;  %p332_p2 = scmp.lt.u32.totalorder %s328_s15, %s504_s4 }
 0x18c   :  { %p334_p3 = pnand %p332_p2, %p329_p1 }
 0x18e   :  { %337 = shalt.err (!%p334_p3)
}
 0x18f   :  { %187 = dma.vmem_to_hbm [thread:$0]  %s182_s10, 256, %s504_s4, [#allocation9], %s369_s28, %s369_s28, %s370_s29  }
 0x190   :  { %s338_s20 = scalar_lea.vmem %s461_s12, 256  ;;  %p343_p5 = scmp.lt.s32.totalorder %s461_s12, %s461_s12 }
 0x191   :  { %p339_p4 = scmp.ne.s32.totalorder %s461_s12, %s338_s20  ;;  %p344_p6 = scmp.lt.s32.totalorder %s338_s20, %s338_s20 }
 0x193   :  { %p345_p7 = por %p344_p6, %p343_p5 }
 0x195   :  { %p346_p8 = pnand %p345_p7, %p339_p4 }
 0x197   :  { %349 = shalt.err (!%p346_p8)
}
 0x198   :  { %s350_s23 = scalar_lea.hbm %s505_s5, 256 }
 0x199   :  { %p351_p9 = scmp.ne.s32.totalorder %s505_s5, %s350_s23  ;;  %p354_p10 = scmp.lt.u32.totalorder %s350_s23, %s505_s5 }
 0x19b   :  { %p356_p11 = pnand %p354_p10, %p351_p9 }
 0x19d   :  { %359 = shalt.err (!%p356_p11)
}
 0x19e   :  { %199 = dma.vmem_to_hbm [thread:$0]  %s461_s12, 256, %s505_s5, [#allocation9], %s369_s28, %s369_s28, %s370_s29  }
 0x19f   :  { %364 = dma.done.wait [#allocation4], 256  }
 0x1a0   :  { %365 = vsyncadd [#allocation4], 4294967040 }
 0x1a1   :  { %366 = dma.done.wait [#allocation9], 512  }
 0x1a2   :  { %367 = vsyncadd [#allocation9], 4294966784 }
 0x1a3   :  { %209 = vsyncpa [#allocation3], 1 }
 0x1a4   :  { %210 = vsyncpa [#allocation6], 1 }
 0x1a5   :  { %211 = vsyncpa [#allocation4], 1 }
 0x1a6   :  { %212 = vsyncpa [#allocation9], 1 }

</bundles_post_ra>
